<compile_context>
chip_gen: v7x
topology: tpu7x:2x2x1
jax: 0.10.0
libtpu: 0.0.40
codegen_flags: <defaults>
</compile_context>

<pallas_src>
import jax
import jax.numpy as jnp
from jax.experimental import pallas as pl
from jax.experimental.pallas import tpu as pltpu


def _round_up(n, m):
    return ((n + m - 1) // m) * m


# ---------------------------------------------------------------------------
# Kernels
# ---------------------------------------------------------------------------
def router_kernel(x_ref, wr_ref, out_ref):
    # (tm, H) @ (H, E_pad) -> (tm, E_pad); router weight pre-transposed and
    # lane-padded so the output block is lane-dense (E_pad multiple of 128).
    out_ref[...] = jnp.dot(x_ref[...], wr_ref[...],
                           preferred_element_type=jnp.float32)


def moe_kernel(cnt_ref,                # SMEM (T_tiles*E,) int32 (scalar prefetch)
               x_ref,                  # (tm, H)      bf16
               wg_ref, wu_ref,         # (1, H, ti)   bf16  (pre-transposed)
               wd_ref,                 # (1, ti, H)   bf16  (pre-transposed)
               rw_ref,                 # (1, tm, 1)   f32   dense routing weight
               swg_ref, swu_ref,       # (H, Is)      bf16  shared expert (pre-T)
               swd_ref,                # (Is, H)      bf16
               wsg_ref,                # (1, H)       f32   shared_expert_gate row
               out_ref):               # (tm, H)      f32   VMEM-resident accumulator
    t = pl.program_id(0)
    e = pl.program_id(1)
    i = pl.program_id(2)
    num_e = pl.num_programs(1)

    # First step for this token tile: initialize the accumulator with the
    # (gated) shared expert output.  This replaces a zero-fill + end-of-grid
    # read-add epilogue, and the extra compute here overlaps the prefetch of
    # the next expert's weight tiles (whereas tail compute would be exposed).
    @pl.when(jnp.logical_and(e == 0, i == 0))
    def _init_with_shared():
        x = x_ref[...]                                                      # (tm, H)
        sg = jnp.dot(x, swg_ref[...], preferred_element_type=jnp.float32)   # (tm, Is)
        su = jnp.dot(x, swu_ref[...], preferred_element_type=jnp.float32)   # (tm, Is)
        sh = ((sg * jax.nn.sigmoid(sg)) * su).astype(swd_ref.dtype)
        sy = jnp.dot(sh, swd_ref[...], preferred_element_type=jnp.float32)  # (tm, H)
        # shared_expert_gate: N=1 "matmul" done as a VPU/XLU lane reduction.
        gate = jax.nn.sigmoid(
            jnp.sum(x.astype(jnp.float32) * wsg_ref[...], axis=-1,
                    keepdims=True))                                         # (tm, 1)
        out_ref[...] = gate * sy

    # Skip experts with no routed tokens in this token tile (saves the MXU
    # work; routing weight is zero for unselected tokens so semantics match).
    @pl.when(cnt_ref[t * num_e + e] > 0)
    def _expert():
        x = x_ref[...]                                                 # (tm, H)
        g = jnp.dot(x, wg_ref[0], preferred_element_type=jnp.float32)  # (tm, ti)
        u = jnp.dot(x, wu_ref[0], preferred_element_type=jnp.float32)  # (tm, ti)
        h = (g * jax.nn.sigmoid(g)) * u                                # silu(g)*u, f32
        # fold the routing weight into h before the down-projection
        hw = (h * rw_ref[0]).astype(wd_ref.dtype)                      # (tm, ti) bf16
        out_ref[...] += jnp.dot(hw, wd_ref[0],
                                preferred_element_type=jnp.float32)    # (tm, H)


# ---------------------------------------------------------------------------
# Wrapper
# ---------------------------------------------------------------------------
def sparse_moe_block(hidden_states, params, *, top_k, norm_topk_prob=True):
    """hidden_states: (B, S, H).  Returns (final (B,S,H), router_logits (T,E))."""
    B, S, H = hidden_states.shape
    T = B * S
    x = hidden_states.reshape(T, H).astype(jnp.float32)

    wr = params["router"]                  # (E, H)
    wg = params["expert_gate"]             # (E, I, H)
    wu = params["expert_up"]               # (E, I, H)
    wd = params["expert_down"]             # (E, H, I)
    swg = params["shared_gate"]            # (Is, H)
    swu = params["shared_up"]              # (Is, H)
    swd = params["shared_down"]            # (H, Is)
    wsg = params["shared_expert_gate"]     # (1, H)

    E, I, _ = wg.shape
    Is = swg.shape[0]

    # ---- tiling (MXU-aligned, VMEM-budgeted) ----
    tm = 256 if T >= 256 else max(8, _round_up(T, 8))
    T_pad = _round_up(T, tm)
    T_tiles = T_pad // tm
    if I > 256 and I % 256 == 0:
        ti = 256
    elif I > 128 and I % 128 == 0:
        ti = 128
    else:
        ti = I
    I_tiles = I // ti
    E_pad = _round_up(E, 128)
    # TODO(synk): at production shared_expert_intermediate_size the shared
    # weights should also be tiled over Is instead of held as full blocks.

    # ---- one-time parameter prep (pre-transpose + bf16 cast for the MXU) ----
    wdt = jnp.bfloat16
    wg_t = jnp.transpose(wg, (0, 2, 1)).astype(wdt)        # (E, H, I)
    wu_t = jnp.transpose(wu, (0, 2, 1)).astype(wdt)        # (E, H, I)
    wd_t = jnp.transpose(wd, (0, 2, 1)).astype(wdt)        # (E, I, H)
    swg_t = swg.T.astype(wdt)                              # (H, Is)
    swu_t = swu.T.astype(wdt)                              # (H, Is)
    swd_t = swd.T.astype(wdt)                              # (Is, H)
    wsg_f = wsg.astype(jnp.float32)                        # (1, H)
    wr_t = jnp.zeros((H, E_pad), jnp.float32).at[:, :E].set(wr.T)

    x_pad = jnp.pad(x, ((0, T_pad - T), (0, 0)))           # f32 (router)
    x_bf = x_pad.astype(wdt)                               # bf16 (experts)

    # ---- router logits (Pallas, f32, lane-padded expert dim) ----
    logits_pad = pl.pallas_call(
        router_kernel,
        out_shape=jax.ShapeDtypeStruct((T_pad, E_pad), jnp.float32),
        grid=(T_tiles,),
        in_specs=[pl.BlockSpec((tm, H), lambda t: (t, 0)),
                  pl.BlockSpec((H, E_pad), lambda t: (0, 0))],
        out_specs=pl.BlockSpec((tm, E_pad), lambda t: (t, 0)),
        compiler_params=pltpu.CompilerParams(
            dimension_semantics=("parallel",)),
    )(x_pad, wr_t)
    router_logits = logits_pad[:T, :E]

    # ---- softmax / top-k / renorm glue (plain JAX, f32) ----
    routing_weights = jax.nn.softmax(router_logits, axis=-1)
    topk_vals, topk_idx = jax.lax.top_k(routing_weights, top_k)
    if norm_topk_prob:
        topk_vals = topk_vals / jnp.sum(topk_vals, axis=-1, keepdims=True)
    onehot = jax.nn.one_hot(topk_idx, E, dtype=jnp.float32)          # (T, K, E)
    dense_rw = jnp.einsum("tke,tk->te", onehot, topk_vals)           # (T, E)
    dense_rw = jnp.pad(dense_rw, ((0, T_pad - T), (0, 0)))
    rw_per_expert = dense_rw.T.reshape(E, T_pad, 1)                  # (E, T_pad, 1)

    # per-(token-tile, expert) routed-token counts for SMEM scalar prefetch;
    # flattened to 1D to dodge 2D SMEM (8,128)-word padding.
    sel = jnp.pad(jnp.sum(onehot, axis=1), ((0, T_pad - T), (0, 0)))
    counts = sel.reshape(T_tiles, tm, E).sum(axis=1).astype(jnp.int32)
    counts_flat = counts.reshape(-1)                                 # (T_tiles*E,)

    # ---- fused routed experts + shared expert (Pallas) ----
    cost = pl.CostEstimate(
        flops=int(6 * T * top_k * H * I + 6 * T * H * Is),
        transcendentals=int(T * top_k * I + T * Is + T),
        bytes_accessed=int(2 * (3 * E * H * I + 3 * H * Is)
                           + 4 * T_pad * (2 * H + E)),
    )

    grid_spec = pltpu.PrefetchScalarGridSpec(
        num_scalar_prefetch=1,
        grid=(T_tiles, E, I_tiles),
        in_specs=[
            pl.BlockSpec((tm, H),    lambda t, e, i, c: (t, 0)),     # x (bf16)
            pl.BlockSpec((1, H, ti), lambda t, e, i, c: (e, 0, i)),  # gate_proj
            pl.BlockSpec((1, H, ti), lambda t, e, i, c: (e, 0, i)),  # up_proj
            pl.BlockSpec((1, ti, H), lambda t, e, i, c: (e, i, 0)),  # down_proj
            pl.BlockSpec((1, tm, 1), lambda t, e, i, c: (e, t, 0)),  # routing w
            pl.BlockSpec((H, Is),    lambda t, e, i, c: (0, 0)),     # shared gate
            pl.BlockSpec((H, Is),    lambda t, e, i, c: (0, 0)),     # shared up
            pl.BlockSpec((Is, H),    lambda t, e, i, c: (0, 0)),     # shared down
            pl.BlockSpec((1, H),     lambda t, e, i, c: (0, 0)),     # shared gate row
        ],
        out_specs=pl.BlockSpec((tm, H), lambda t, e, i, c: (t, 0)),
    )

    out_pad = pl.pallas_call(
        moe_kernel,
        out_shape=jax.ShapeDtypeStruct((T_pad, H), jnp.float32),
        grid_spec=grid_spec,
        compiler_params=pltpu.CompilerParams(
            dimension_semantics=("parallel", "arbitrary", "arbitrary")),
        cost_estimate=cost,
    )(counts_flat, x_bf, wg_t, wu_t, wd_t, rw_per_expert,
      swg_t, swu_t, swd_t, wsg_f)

    final = out_pad[:T].astype(hidden_states.dtype).reshape(B, S, H)
    return final, router_logits


# ---------------------------------------------------------------------------
# Pure-JAX reference (f32, for correctness check)
# ---------------------------------------------------------------------------
def reference(hidden_states, params, *, top_k, norm_topk_prob=True):
    B, S, H = hidden_states.shape
    x = hidden_states.reshape(-1, H).astype(jnp.float32)
    logits = x @ params["router"].T
    rw = jax.nn.softmax(logits, axis=1)
    vals, idx = jax.lax.top_k(rw, top_k)
    if norm_topk_prob:
        vals = vals / jnp.sum(vals, axis=-1, keepdims=True)
    E = params["router"].shape[0]
    dense = jnp.sum(jax.nn.one_hot(idx, E) * vals[..., None], axis=1)

    def expert(e):
        g = x @ params["expert_gate"][e].T
        u = x @ params["expert_up"][e].T
        return ((g * jax.nn.sigmoid(g)) * u) @ params["expert_down"][e].T

    out = jnp.zeros_like(x)
    for e in range(E):
        out = out + dense[:, e:e + 1] * expert(e)

    g = x @ params["shared_gate"].T
    u = x @ params["shared_up"].T
    sh = ((g * jax.nn.sigmoid(g)) * u) @ params["shared_down"].T
    sh = jax.nn.sigmoid(x @ params["shared_expert_gate"].T) * sh
    return (out + sh).reshape(B, S, H), logits


# ---------------------------------------------------------------------------
if __name__ == "__main__":
    # small config consistent with the module
    B, S = 2, 8
    H = 128            # hidden_size
    I = 128            # moe_intermediate_size
    Is = 128           # shared_expert_intermediate_size
    E = 8              # num_experts
    TOP_K = 2          # num_experts_per_tok
    NORM_TOPK = True

    key = jax.random.PRNGKey(0)
    ks = jax.random.split(key, 9)
    scale = 0.05
    params = {
        "router": jax.random.normal(ks[0], (E, H), jnp.float32) * scale,
        "expert_gate": jax.random.normal(ks[1], (E, I, H), jnp.float32) * scale,
        "expert_up": jax.random.normal(ks[2], (E, I, H), jnp.float32) * scale,
        "expert_down": jax.random.normal(ks[3], (E, H, I), jnp.float32) * scale,
        "shared_gate": jax.random.normal(ks[4], (Is, H), jnp.float32) * scale,
        "shared_up": jax.random.normal(ks[5], (Is, H), jnp.float32) * scale,
        "shared_down": jax.random.normal(ks[6], (H, Is), jnp.float32) * scale,
        "shared_expert_gate": jax.random.normal(ks[7], (1, H), jnp.float32) * scale,
    }
    hidden_states = jax.random.normal(ks[8], (B, S, H), jnp.float32)

    final, logits = sparse_moe_block(
        hidden_states, params, top_k=TOP_K, norm_topk_prob=NORM_TOPK
    )
    final = jax.block_until_ready(final)
    logits = jax.block_until_ready(logits)

    ref_final, ref_logits = reference(
        hidden_states, params, top_k=TOP_K, norm_topk_prob=NORM_TOPK
    )
    assert final.shape == (B, S, H) and logits.shape == (B * S, E)
    # router path is f32 -> tight; expert path uses bf16 MXU matmuls with f32
    # accumulation -> compare against the f32 reference with bf16 tolerance.
    assert jnp.allclose(logits, ref_logits, rtol=5e-3, atol=5e-3)
    assert jnp.allclose(final, ref_final, rtol=3e-2, atol=3e-2)

    print("KERNEL_OK")
</pallas_src>

<mosaic_0001>
module attributes {stable_mosaic.version = 11 : i64} {
  func.func @router_kernel(%arg0: i32, %arg1: memref<16x128xf32, #tpu.memory_space<vmem>>, %arg2: memref<128x128xf32, #tpu.memory_space<vmem>>, %arg3: memref<16x128xf32, #tpu.memory_space<vmem>>) attributes {dimension_semantics = [#tpu.dimension_semantics<parallel>], iteration_bounds = array<i64: 1>, scalar_prefetch = 0 : i64, scratch_operands = 0 : i64, tpu.core_type = #tpu.core_type<tc>, window_params = [{transform_indices = @transform_0, window_bounds = array<i64: 16, 128>}, {pipeline_mode = #tpu.pipeline_mode<synchronous>, transform_indices = @transform_1, window_bounds = array<i64: 128, 128>}, {transform_indices = @transform_2, window_bounds = array<i64: 16, 128>}]} {
    %c0 = arith.constant 0 : index
    %c0_0 = arith.constant 0 : index
    %0 = vector.load %arg1[%c0, %c0_0] : memref<16x128xf32, #tpu.memory_space<vmem>>, vector<16x128xf32>
    %c0_1 = arith.constant 0 : index
    %c0_2 = arith.constant 0 : index
    %1 = vector.load %arg2[%c0_1, %c0_2] : memref<128x128xf32, #tpu.memory_space<vmem>>, vector<128x128xf32>
    %cst = arith.constant dense<0.000000e+00> : vector<16x128xf32>
    %2 = tpu.matmul %0, %1, %cst {dimension_numbers = #tpu.dot_dimension_numbers<[1], [0], [0], [1], [0, 0, 1, 1], [], []>} : vector<16x128xf32>, vector<128x128xf32>, vector<16x128xf32> -> vector<16x128xf32>
    %c0_3 = arith.constant 0 : index
    %c0_4 = arith.constant 0 : index
    %3 = vector.load %arg3[%c0_3, %c0_4] : memref<16x128xf32, #tpu.memory_space<vmem>>, vector<16x128xf32>
    tpu.vector_store %arg3[%c0_3, %c0_4], %2 {strides = array<i32>} : memref<16x128xf32, #tpu.memory_space<vmem>>, vector<16x128xf32>,
    return
  }
  func.func @transform_0(%arg0: i32) -> (i32, i32) {
    %c0_i32 = arith.constant 0 : i32
    %c0_i32_0 = arith.constant 0 : i32
    return %arg0, %c0_i32 : i32, i32
  }
  func.func @transform_1(%arg0: i32) -> (i32, i32) {
    %c0_i32 = arith.constant 0 : i32
    %c0_i32_0 = arith.constant 0 : i32
    %c0_i32_1 = arith.constant 0 : i32
    return %c0_i32, %c0_i32_0 : i32, i32
  }
  func.func @transform_2(%arg0: i32) -> (i32, i32) {
    %c0_i32 = arith.constant 0 : i32
    %c0_i32_0 = arith.constant 0 : i32
    return %arg0, %c0_i32 : i32, i32
  }
}

</mosaic_0001>

<bundles_post_ra>
// kernel: tpu_custom_call.1
= control target key start
LH: loop header
LB: loop body
LE: loop exit
PB: predicated region body
PF: predicated region fallthrough
CT: control target
= control target key end

     0   :  { %7 = vsyncpa [#allocation3], 0  ;;  %s380_s0 = inlined_call_operand.hbm [shape: f32[16,128], index: 0, kind: input, shape index: {}]   ;;  %s381_s1 = inlined_call_operand.hbm [shape: f32[128,128], index: 1, kind: input, shape index: {}]   ;;  %s382_s2 = inlined_call_operand.hbm [shape: f32[16,128], index: 2, kind: output, shape index: {}]  }
   0x1   :  { %8 = vsyncpa [#allocation6], 0 }
   0x2   :  { %9 = vsyncpa [#allocation4], 0  ;;  %s315_s9 = smov [#allocation2]   ;;  %s243_s13 = scalar_lea.hbm %s380_s0, 256 }
   0x3   :  { %s15_s10 = sshll.u32 %s315_s9, 4  ;;  %p244_p0 = scmp.ne.s32.totalorder %s380_s0, %s243_s13  ;;  %s16_s10 = int_to_ptr.vmem [resolvable:$true] %s15_s10 }
   0x4   :  { %p247_p1 = scmp.lt.u32.totalorder %s243_s13, %s380_s0 }
   0x6   :  { %p249_p2 = pnand %p247_p1, %p244_p0 }
   0x8   :  { %252 = shalt.err (!%p249_p2)
}
   0x9   :  { %s253_s18 = scalar_lea.vmem %s16_s10, 256  ;;  %p258_p4 = scmp.lt.s32.totalorder %s16_s10, %s16_s10 }
   0xa   :  { %p254_p3 = scmp.ne.s32.totalorder %s16_s10, %s253_s18  ;;  %p259_p5 = scmp.lt.s32.totalorder %s253_s18, %s253_s18 }
   0xc   :  { %p260_p6 = por %p259_p5, %p258_p4 }
   0xe   :  { %p261_p7 = pnand %p260_p6, %p254_p3 }
  0x10   :  { %264 = shalt.err (!%p261_p7)
}
  0x11   :  { %s316_s19 = smov 128   ;;  %s317_s20 = smov 8  }
  0x12   :  { %21 = dma.hbm_to_vmem [thread:$0]  %s380_s0, 256, %s16_s10, [#allocation3], %s316_s19, %s316_s19, %s317_s20  }
  0x13   :  { %s318_s23 = smov [#allocation5]   ;;  %s265_s27 = scalar_lea.hbm %s381_s1, 2048 }
  0x14   :  { %s27_s24 = sshll.u32 %s318_s23, 4  ;;  %p266_p8 = scmp.ne.s32.totalorder %s381_s1, %s265_s27  ;;  %s28_s24 = int_to_ptr.vmem [resolvable:$true] %s27_s24 }
  0x15   :  { %p269_p9 = scmp.lt.u32.totalorder %s265_s27, %s381_s1 }
  0x17   :  { %p271_p10 = pnand %p269_p9, %p266_p8 }
  0x19   :  { %274 = shalt.err (!%p271_p10)
}
  0x1a   :  { %s275_s4 = scalar_lea.vmem %s28_s24, 2048  ;;  %p280_p12 = scmp.lt.s32.totalorder %s28_s24, %s28_s24 }
  0x1b   :  { %p276_p11 = scmp.ne.s32.totalorder %s28_s24, %s275_s4  ;;  %p281_p13 = scmp.lt.s32.totalorder %s275_s4, %s275_s4 }
  0x1d   :  { %p282_p0 = por %p281_p13, %p280_p12 }
  0x1f   :  { %p283_p1 = pnand %p282_p0, %p276_p11 }
  0x21   :  { %286 = shalt.err (!%p283_p1)
}
  0x22   :  { %33 = dma.hbm_to_vmem [thread:$0]  %s381_s1, 2048, %s28_s24, [#allocation6], %s316_s19, %s316_s19, %s317_s20  }
  0x23   :  { %309 = dma.done.wait [#allocation3], 256  }
  0x24   :  { %310 = vsyncadd [#allocation3], 4294967040 }
  0x25   :  { %311 = dma.done.wait [#allocation6], 2048  }
  0x26   :  { %312 = vsyncadd [#allocation6], 4294965248  ;;  %v42_v0 = vld [vmem:[#allocation5] sm:$0xff]  ;;  %v43_v1 = vld [vmem:[#allocation5 + $0x8] sm:$0xff]  ;;  %s319_s1 = smov [#allocation7]  }
  0x27   :  { %v44_v2 = vld [vmem:[#allocation5 + $0x10] sm:$0xff]  ;;  %v206_v3 = vpack.c.bf16 %v43_v1, %v42_v0  ;;  %v45_v4 = vld [vmem:[#allocation5 + $0x18] sm:$0xff]  ;;  %v46_v6 = vld [vmem:[#allocation5 + $0x20] sm:$0xff]  ;;  %s140_s6 = sshll.u32 %s319_s1, 4  ;;  %s141_s6 = int_to_ptr.vmem [resolvable:$true] %s140_s6 }
  0x28   :  { %v210_v5 = vpack.c.bf16 %v45_v4, %v44_v2  ;;  %v47_v7 = vld [vmem:[#allocation5 + $0x28] sm:$0xff]  ;;  %v40_v9 = vld [vmem:[#allocation2] sm:$0xff]  ;;  %v49_v11 = vld [vmem:[#allocation5 + $0x38] sm:$0xff]  ;;  %s287_s7 = scalar_lea.vmem %s141_s6, 256  ;;  %p292_p3 = scmp.lt.s32.totalorder %s141_s6, %s141_s6 }
  0x29   :  { %207 = vmatprep.subr.bf16.mxu0 %v206_v3  ;;  %v214_v8 = vpack.c.bf16 %v47_v7, %v46_v6  ;;  %v48_v10 = vld [vmem:[#allocation5 + $0x30] sm:$0xff]  ;;  %203 = vmatprep.mubr.f32.mxu0 %v40_v9  ;;  %v50_v13 = vld [vmem:[#allocation5 + $0x40] sm:$0xff]  ;;  %v51_v14 = vld [vmem:[#allocation5 + $0x48] sm:$0xff]  ;;  %p288_p2 = scmp.ne.s32.totalorder %s141_s6, %s287_s7  ;;  %p293_p4 = scmp.lt.s32.totalorder %s287_s7, %s287_s7 }
  0x2a   :  { %209 = vmatpush3.bf16.msra.mxu0 %v206_v3  ;;  %v218_v12 = vpack.c.bf16 %v49_v11, %v48_v10  ;;  %v222_v15 = vpack.c.bf16 %v51_v14, %v50_v13  ;;  %v52_v16 = vld [vmem:[#allocation5 + $0x50] sm:$0xff]  ;;  %v53_v17 = vld [vmem:[#allocation5 + $0x58] sm:$0xff]  ;;  %v54_v19 = vld [vmem:[#allocation5 + $0x60] sm:$0xff] }
  0x2b   :  { %211 = vmatprep.subr.bf16.mxu0 %v210_v5  ;;  %v226_v18 = vpack.c.bf16 %v53_v17, %v52_v16  ;;  %v55_v20 = vld [vmem:[#allocation5 + $0x68] sm:$0xff]  ;;  %v56_v22 = vld [vmem:[#allocation5 + $0x70] sm:$0xff]  ;;  %v57_v23 = vld [vmem:[#allocation5 + $0x78] sm:$0xff]  ;;  %p294_p5 = por %p293_p4, %p292_p3 }
  0x2c   :  { %v230_v21 = vpack.c.bf16 %v55_v20, %v54_v19  ;;  %v234_v24 = vpack.c.bf16 %v57_v23, %v56_v22  ;;  %v41_v25 = vld [vmem:[#allocation2 + $0x8] sm:$0xff] }
  0x2d   :  { %p295_p6 = pnand %p294_p5, %p288_p2 }
  0x2e   :  { %213 = vmatpush3.bf16.msra.mxu0 %v210_v5 }
  0x2f   :  { %215 = vmatprep.subr.bf16.mxu0 %v214_v8 }
  0x32   :  { %217 = vmatpush3.bf16.msra.mxu0 %v214_v8 }
  0x33   :  { %219 = vmatprep.subr.bf16.mxu0 %v218_v12 }
  0x36   :  { %221 = vmatpush3.bf16.msra.mxu0 %v218_v12 }
  0x37   :  { %223 = vmatprep.subr.bf16.mxu0 %v222_v15 }
  0x3a   :  { %225 = vmatpush3.bf16.msra.mxu0 %v222_v15 }
  0x3b   :  { %227 = vmatprep.subr.bf16.mxu0 %v226_v18 }
  0x3e   :  { %229 = vmatpush3.bf16.msra.mxu0 %v226_v18 }
  0x3f   :  { %231 = vmatprep.subr.bf16.mxu0 %v230_v21 }
  0x42   :  { %233 = vmatpush3.bf16.msra.mxu0 %v230_v21 }
  0x43   :  { %235 = vmatprep.subr.bf16.mxu0 %v234_v24 }
  0x46   :  { %237 = vmatpush3.bf16.msra.mxu0 %v234_v24 }
  0x49   :  { %204 = vmatmul.mubr.f32.vlgmr.msra.gmra.mrb[0].mxu0 %v41_v25 }
 0x11c   :  { %v205_v26 = vpop.f32.mrb[0].mxu0 }
 0x11d   :  { %134 = vst [vmem:[#allocation7 + $0x8] sm:$0xff] %v205_v26  ;;  %v124_v27 = vpop.f32.mrb[1].mxu0 }
 0x11e   :  { %133 = vst [vmem:[#allocation7] sm:$0xff] %v124_v27 }
 0x11f   :  { %298 = shalt.err (!%p295_p6)
}
 0x120   :  { %s299_s10 = scalar_lea.hbm %s382_s2, 256 }
 0x121   :  { %p300_p7 = scmp.ne.s32.totalorder %s382_s2, %s299_s10  ;;  %p303_p8 = scmp.lt.u32.totalorder %s299_s10, %s382_s2 }
 0x123   :  { %p305_p9 = pnand %p303_p8, %p300_p7 }
 0x125   :  { %308 = shalt.err (!%p305_p9)
}
 0x126   :  { %146 = dma.vmem_to_hbm [thread:$0]  %s141_s6, 256, %s382_s2, [#allocation4], %s316_s19, %s316_s19, %s317_s20  }
 0x127   :  { %313 = dma.done.wait [#allocation4], 256  }
 0x128   :  { %314 = vsyncadd [#allocation4], 4294967040 }
 0x129   :  { %150 = vsyncpa [#allocation3], 1 }
 0x12a   :  { %151 = vsyncpa [#allocation6], 1 }
 0x12b   :  { %152 = vsyncpa [#allocation4], 1 }

</bundles_post_ra>
